<compile_context>
chip_gen: v7x
topology: tpu7x:2x2x1
jax: 0.10.0
libtpu: 0.0.40
codegen_flags: <defaults>
</compile_context>

<pallas_src>
import functools

import numpy as np
import jax
import jax.numpy as jnp
from jax.experimental import pallas as pl
from jax.experimental.pallas import tpu as pltpu


# ------------------------- fused conv + correlation + softmax kernel -------------------------
def _spatial_weights_fused_kernel(w_ref, u_ref, mask_ref, o_ref, corr_ref, *,
                                  channels, h, w, patch, window, Wp, L):
    pad = patch // 2
    wpad = window // 2
    WW = window * window
    center = (WW - 1) // 2
    a1 = wpad * Wp + wpad                         # flat offset of the "center" descriptor view
    Lc = (h - 1 + 2 * pad) * Wp + (w + 2 * pad)   # correlation-map length read by the box-sum
    Lext = Lc + a1                                # + headroom so mirrored offsets are pure slices
    Lh = L + (patch - 1) * Wp                     # horizontal box-sum output length

    # ---- fused 1x1 conv (phi) ---------------------------------------------------------------
    # u_ref[0] is (c, Hp*Wp): the zero-padded frame with flat spatial on the lane axis.
    # conv(0) = 0 and there is no bias, so this *is* the zero-padded phi.
    U = u_ref[0]
    Wm = w_ref[...]
    if channels <= 16:
        # Tiny channel count: c^2 VPU broadcast-MACs instead of pushing a (c,c) tile through
        # the 128x128 / 256x256 MXU (which would serialize on the MXU push/pop path).
        F = Wm[:, 0:1] * U[0:1, :]
        for j in range(1, channels):
            F = F + Wm[:, j:j + 1] * U[j:j + 1, :]
    else:
        # TODO(synk): for large c feed bf16 operands (f32 accumulation) to double the MXU rate
        # on v5e/v6e/v7x once the accuracy budget allows.
        F = jnp.dot(Wm, U, preferred_element_type=jnp.float32)

    # ---- per-pixel channel correlations, stacked on the sublane axis -------------------------
    # corr_k(x) = sum_c F[c, a1+x] * F[c, a2_k+x].  Only k <= center is computed (on an extended
    # domain); the mirrored offsets satisfy corr_{WW-1-k}(x) = corr_k(x + a1 - a2_k) and are
    # plain lane-shifted copies -> ~2x less multiply + cross-sublane-reduce work.
    corr_ref[...] = jnp.zeros_like(corr_ref)
    G = F[:, a1:a1 + Lext]                        # (c, Lext); a1 + Lext == Hp*Wp exactly
    for k in range(center + 1):                   # static unroll over the lower half + center
        dy, dx = k // window, k % window
        a2 = dy * Wp + dx
        row = jnp.sum(G * F[:, a2:a2 + Lext], axis=0, keepdims=True)   # (1, Lext)
        corr_ref[k:k + 1, :] = row
        if k < center:
            shift = a1 - a2
            corr_ref[WW - 1 - k:WW - k, 0:Lc] = row[:, shift:shift + Lc]

    # ---- separable P x P box-sum on the stacked maps -----------------------------------------
    # box-sum(corr_k) == descriptor dot product.  Stacked (WW rows on sublanes) + separable:
    # 2*(P-1) full-occupancy shifted adds instead of WW*(P*P-1) single-sublane adds.
    C = corr_ref[...]                             # (WW, Lext)
    S = C[:, 0:Lh]
    for px in range(1, patch):
        S = S + C[:, px:px + Lh]
    A = S[:, 0:L]
    for py in range(1, patch):
        off = py * Wp
        A = A + S[:, off:off + L]

    # ---- zero out-of-image window neighbors, softmax over the W*W (sublane) axis -------------
    A = A * mask_ref[...].astype(jnp.float32)
    m = jnp.max(A, axis=0, keepdims=True)
    e = jnp.exp(A - m)
    inv = pl.reciprocal(jnp.sum(e, axis=0, keepdims=True), approx=False)
    o_ref[0] = (e * inv).astype(o_ref.dtype)      # lane-dense (WW, L) store


# --------------------------------------------- wrapper ---------------------------------------
def spatial_weights_es_dot(u_nchw, w_phi, *, window_size, patch_size):
    b, c, h, w = u_nchw.shape
    P, W = patch_size, window_size
    assert P % 2 == 1 and W % 2 == 1, "odd patch/window expected (PyTorch 'same' unfold padding)"
    pad, wpad = P // 2, W // 2
    tpad = pad + wpad
    Hp, Wp = h + 2 * tpad, w + 2 * tpad
    L = (h - 1) * Wp + w                 # flat length covering every output position i*Wp + j
    Lc = (h - 1 + 2 * pad) * Wp + (w + 2 * pad)
    Lext = Lc + wpad * Wp + wpad
    WW = W * W

    # Pad the *input* once (cheap) and flatten spatial onto the last (lane) axis.
    # TODO(synk): move this zero-padding into the kernel (strided row scatter of the unpadded
    # frame into a zeroed VMEM scratch) to drop the padded-frame HBM round trip on v5e/v6e.
    u_pad = jnp.pad(u_nchw.astype(jnp.float32),
                    ((0, 0), (0, 0), (tpad, tpad), (tpad, tpad)))
    u_flat = u_pad.reshape(b, c, Hp * Wp)

    # Static 0/1 validity mask (bf16 to halve its HBM/VMEM footprint): window neighbors outside
    # the image have an all-zero descriptor in the reference, so their att entry is exactly 0.
    g = np.arange(L)
    row, col = g // Wp, g % Wp
    mask = np.zeros((WW, L), np.float32)
    for k in range(WW):
        ddy, ddx = k // W - wpad, k % W - wpad
        mask[k] = ((row + ddy >= 0) & (row + ddy < h) &
                   (col + ddx >= 0) & (col + ddx < w))
    mask = jnp.asarray(mask, dtype=jnp.bfloat16)

    kern = functools.partial(_spatial_weights_fused_kernel,
                             channels=c, h=h, w=w, patch=P, window=W, Wp=Wp, L=L)

    # Explicit scoped-VMEM budget: double-buffered blocks + scratch with slack, clamped so it
    # stays comfortably under v7x's 64 MiB physical VMEM at these shapes.  Large frames should
    # use the row-tiling TODO below instead of a bigger limit.
    f32 = 4
    block_bytes = (c * c + c * Hp * Wp + WW * L // 2 + WW * L) * f32
    scratch_bytes = WW * Lext * f32
    vmem_limit = int(min(max(4 * block_bytes + 2 * scratch_bytes, 32 * 1024 * 1024),
                         100 * 1024 * 1024))

    out_flat = pl.pallas_call(
        kern,
        out_shape=jax.ShapeDtypeStruct((b, WW, L), jnp.float32),
        grid=(b,),
        in_specs=[
            pl.BlockSpec((c, c), lambda i: (0, 0)),              # conv weight (shared)
            pl.BlockSpec((1, c, Hp * Wp), lambda i: (i, 0, 0)),  # padded input, per batch
            pl.BlockSpec((WW, L), lambda i: (0, 0)),             # neighbor-valid mask (shared)
        ],
        out_specs=pl.BlockSpec((1, WW, L), lambda i: (i, 0, 0)),
        scratch_shapes=[pltpu.VMEM((WW, Lext), jnp.float32)],    # stacked correlation maps
        compiler_params=pltpu.CompilerParams(
            dimension_semantics=("parallel",),
            vmem_limit_bytes=vmem_limit),
    )(w_phi.astype(jnp.float32), u_flat, mask)
    # TODO(synk): for large frames add a spatial row-tile grid axis with a (P//2 + W//2) halo —
    # mandatory on v7x (64 MiB VMEM; a parallel spatial axis also feeds both TensorCores even
    # at b == 1) — and consider a bf16 output store once the tolerance budget allows.

    # Un-flatten the lane-dense kernel output back to (b, h, w, 1, W*W)  (wrapper glue).
    out = jnp.pad(out_flat, ((0, 0), (0, 0), (0, h * Wp - L)))
    out = out.reshape(b, WW, h, Wp)[:, :, :, :w]
    return jnp.transpose(out, (0, 2, 3, 1)).reshape(b, h, w, 1, WW)


# ------------------------------------- pure-JAX reference ------------------------------------
def reference(u_nchw, w_phi, *, window_size, patch_size):
    b, c, h, w = u_nchw.shape
    P, W = patch_size, window_size
    phi = jnp.einsum("oc,bchw->bohw", w_phi, u_nchw)
    pad = P // 2
    phi_p = jnp.pad(phi, ((0, 0), (0, 0), (pad, pad), (pad, pad)))
    desc = jnp.stack(
        [phi_p[:, :, py:py + h, px:px + w] for py in range(P) for px in range(P)],
        axis=2,
    ).reshape(b, c * P * P, h, w)
    wpad = W // 2
    desc_p = jnp.pad(desc, ((0, 0), (0, 0), (wpad, wpad), (wpad, wpad)))
    att = jnp.stack(
        [
            jnp.sum(desc * desc_p[:, :, dy:dy + h, dx:dx + w], axis=1)
            for dy in range(W)
            for dx in range(W)
        ],
        axis=-1,
    )  # (b, h, w, W*W)
    att = jax.nn.softmax(att, axis=-1)
    return att[:, :, :, None, :]


if __name__ == "__main__":
    # small shapes consistent with the module
    B, C, H, Wd = 2, 4, 16, 16
    WINDOW, PATCH = 3, 3

    key = jax.random.PRNGKey(0)
    k_u, k_phi, k_theta = jax.random.split(key, 3)
    u = jax.random.normal(k_u, (B, C, H, Wd), dtype=jnp.float32)

    # Conv2d(c, c, 1, bias=False) weights, squeezed to (c, c)
    w_phi = jax.random.normal(k_phi, (C, C), dtype=jnp.float32) * (1.0 / jnp.sqrt(C))
    # theta conv exists in __init__ but the forward pass only uses self.phi; kept for parity.
    w_theta = jax.random.normal(k_theta, (C, C), dtype=jnp.float32) * (1.0 / jnp.sqrt(C))
    del w_theta  # unused, matches the PyTorch forward

    out = spatial_weights_es_dot(u, w_phi, window_size=WINDOW, patch_size=PATCH)
    out = jax.block_until_ready(out)

    ref = reference(u, w_phi, window_size=WINDOW, patch_size=PATCH)
    assert out.shape == (B, H, Wd, 1, WINDOW * WINDOW), out.shape
    err = float(jnp.max(jnp.abs(out - ref)))
    assert err < 1e-4, err

    print("KERNEL_OK")
</pallas_src>

<mosaic_0001>
module attributes {stable_mosaic.version = 11 : i64} {
  func.func @_spatial_weights_fused_kernel(%arg0: i32, %arg1: memref<4x4xf32, #tpu.memory_space<vmem>>, %arg2: memref<1x4x400xf32, #tpu.memory_space<vmem>>, %arg3: memref<9x316xbf16, #tpu.memory_space<vmem>>, %arg4: memref<1x9x316xf32, #tpu.memory_space<vmem>>, %arg5: memref<9x379xf32, #tpu.memory_space<vmem>>) attributes {dimension_semantics = [#tpu.dimension_semantics<parallel>], iteration_bounds = array<i64: 2>, scalar_prefetch = 0 : i64, scratch_operands = 1 : i64, tpu.core_type = #tpu.core_type<tc>, window_params = [{pipeline_mode = #tpu.pipeline_mode<synchronous>, transform_indices = @transform_0, window_bounds = array<i64: 4, 4>}, {transform_indices = @transform_1, window_bounds = array<i64: 1, 4, 400>}, {pipeline_mode = #tpu.pipeline_mode<synchronous>, transform_indices = @transform_2, window_bounds = array<i64: 9, 316>}, {transform_indices = @transform_3, window_bounds = array<i64: 1, 9, 316>}]} {
    %c0 = arith.constant 0 : index
    %c0_0 = arith.constant 0 : index
    %c0_1 = arith.constant 0 : index
    %0 = vector.load %arg2[%c0, %c0_0, %c0_1] : memref<1x4x400xf32, #tpu.memory_space<vmem>>, vector<1x4x400xf32>
    %1 = vector.shape_cast %0 : vector<1x4x400xf32> to vector<4x400xf32>
    %c0_2 = arith.constant 0 : index
    %c0_3 = arith.constant 0 : index
    %2 = vector.load %arg1[%c0_2, %c0_3] : memref<4x4xf32, #tpu.memory_space<vmem>>, vector<4x4xf32>
    %3 = vector.extract_strided_slice %2 {offsets = [0, 0], sizes = [4, 1], strides = [1, 1]} : vector<4x4xf32> to vector<4x1xf32>
    %4 = vector.extract_strided_slice %1 {offsets = [0, 0], sizes = [1, 400], strides = [1, 1]} : vector<4x400xf32> to vector<1x400xf32>
    %5 = vector.broadcast %3 : vector<4x1xf32> to vector<4x400xf32>
    %6 = vector.broadcast %4 : vector<1x400xf32> to vector<4x400xf32>
    %7 = arith.mulf %5, %6 : vector<4x400xf32>
    %8 = vector.extract_strided_slice %2 {offsets = [0, 1], sizes = [4, 1], strides = [1, 1]} : vector<4x4xf32> to vector<4x1xf32>
    %9 = vector.extract_strided_slice %1 {offsets = [1, 0], sizes = [1, 400], strides = [1, 1]} : vector<4x400xf32> to vector<1x400xf32>
    %10 = vector.broadcast %8 : vector<4x1xf32> to vector<4x400xf32>
    %11 = vector.broadcast %9 : vector<1x400xf32> to vector<4x400xf32>
    %12 = arith.mulf %10, %11 : vector<4x400xf32>
    %13 = arith.addf %7, %12 : vector<4x400xf32>
    %14 = vector.extract_strided_slice %2 {offsets = [0, 2], sizes = [4, 1], strides = [1, 1]} : vector<4x4xf32> to vector<4x1xf32>
    %15 = vector.extract_strided_slice %1 {offsets = [2, 0], sizes = [1, 400], strides = [1, 1]} : vector<4x400xf32> to vector<1x400xf32>
    %16 = vector.broadcast %14 : vector<4x1xf32> to vector<4x400xf32>
    %17 = vector.broadcast %15 : vector<1x400xf32> to vector<4x400xf32>
    %18 = arith.mulf %16, %17 : vector<4x400xf32>
    %19 = arith.addf %13, %18 : vector<4x400xf32>
    %20 = vector.extract_strided_slice %2 {offsets = [0, 3], sizes = [4, 1], strides = [1, 1]} : vector<4x4xf32> to vector<4x1xf32>
    %21 = vector.extract_strided_slice %1 {offsets = [3, 0], sizes = [1, 400], strides = [1, 1]} : vector<4x400xf32> to vector<1x400xf32>
    %22 = vector.broadcast %20 : vector<4x1xf32> to vector<4x400xf32>
    %23 = vector.broadcast %21 : vector<1x400xf32> to vector<4x400xf32>
    %24 = arith.mulf %22, %23 : vector<4x400xf32>
    %25 = arith.addf %19, %24 : vector<4x400xf32>
    %cst = arith.constant 0.000000e+00 : f32
    %26 = vector.broadcast %cst : f32 to vector<9x379xf32>
    %c0_4 = arith.constant 0 : index
    %c0_5 = arith.constant 0 : index
    %27 = vector.load %arg5[%c0_4, %c0_5] : memref<9x379xf32, #tpu.memory_space<vmem>>, vector<9x379xf32>
    tpu.vector_store %arg5[%c0_4, %c0_5], %26 {strides = array<i32>} : memref<9x379xf32, #tpu.memory_space<vmem>>, vector<9x379xf32>,
    %28 = vector.extract_strided_slice %25 {offsets = [0, 21], sizes = [4, 379], strides = [1, 1]} : vector<4x400xf32> to vector<4x379xf32>
    %29 = vector.extract_strided_slice %25 {offsets = [0, 0], sizes = [4, 379], strides = [1, 1]} : vector<4x400xf32> to vector<4x379xf32>
    %30 = arith.mulf %28, %29 : vector<4x379xf32>
    %cst_6 = arith.constant dense<0.000000e+00> : vector<379xf32>
    %31 = vector.multi_reduction <add>, %30, %cst_6 [0] : vector<4x379xf32> to vector<379xf32>
    %32 = vector.shape_cast %31 : vector<379xf32> to vector<1x379xf32>
    %c0_7 = arith.constant 0 : index
    %c0_8 = arith.constant 0 : index
    %33 = vector.load %arg5[%c0_7, %c0_8] : memref<9x379xf32, #tpu.memory_space<vmem>>, vector<1x379xf32>
    tpu.vector_store %arg5[%c0_7, %c0_8], %32 {strides = array<i32>} : memref<9x379xf32, #tpu.memory_space<vmem>>, vector<1x379xf32>,
    %34 = vector.extract_strided_slice %32 {offsets = [0, 21], sizes = [1, 358], strides = [1, 1]} : vector<1x379xf32> to vector<1x358xf32>
    %c8 = arith.constant 8 : index
    %c0_9 = arith.constant 0 : index
    %35 = vector.load %arg5[%c8, %c0_9] : memref<9x379xf32, #tpu.memory_space<vmem>>, vector<1x358xf32>
    tpu.vector_store %arg5[%c8, %c0_9], %34 {strides = array<i32>} : memref<9x379xf32, #tpu.memory_space<vmem>>, vector<1x358xf32>,
    %36 = vector.extract_strided_slice %25 {offsets = [0, 1], sizes = [4, 379], strides = [1, 1]} : vector<4x400xf32> to vector<4x379xf32>
    %37 = arith.mulf %28, %36 : vector<4x379xf32>
    %cst_10 = arith.constant dense<0.000000e+00> : vector<379xf32>
    %38 = vector.multi_reduction <add>, %37, %cst_10 [0] : vector<4x379xf32> to vector<379xf32>
    %39 = vector.shape_cast %38 : vector<379xf32> to vector<1x379xf32>
    %c1 = arith.constant 1 : index
    %c0_11 = arith.constant 0 : index
    %40 = vector.load %arg5[%c1, %c0_11] : memref<9x379xf32, #tpu.memory_space<vmem>>, vector<1x379xf32>
    tpu.vector_store %arg5[%c1, %c0_11], %39 {strides = array<i32>} : memref<9x379xf32, #tpu.memory_space<vmem>>, vector<1x379xf32>,
    %41 = vector.extract_strided_slice %39 {offsets = [0, 20], sizes = [1, 358], strides = [1, 1]} : vector<1x379xf32> to vector<1x358xf32>
    %c7 = arith.constant 7 : index
    %c0_12 = arith.constant 0 : index
    %42 = vector.load %arg5[%c7, %c0_12] : memref<9x379xf32, #tpu.memory_space<vmem>>, vector<1x358xf32>
    tpu.vector_store %arg5[%c7, %c0_12], %41 {strides = array<i32>} : memref<9x379xf32, #tpu.memory_space<vmem>>, vector<1x358xf32>,
    %43 = vector.extract_strided_slice %25 {offsets = [0, 2], sizes = [4, 379], strides = [1, 1]} : vector<4x400xf32> to vector<4x379xf32>
    %44 = arith.mulf %28, %43 : vector<4x379xf32>
    %cst_13 = arith.constant dense<0.000000e+00> : vector<379xf32>
    %45 = vector.multi_reduction <add>, %44, %cst_13 [0] : vector<4x379xf32> to vector<379xf32>
    %46 = vector.shape_cast %45 : vector<379xf32> to vector<1x379xf32>
    %c2 = arith.constant 2 : index
    %c0_14 = arith.constant 0 : index
    %47 = vector.load %arg5[%c2, %c0_14] : memref<9x379xf32, #tpu.memory_space<vmem>>, vector<1x379xf32>
    tpu.vector_store %arg5[%c2, %c0_14], %46 {strides = array<i32>} : memref<9x379xf32, #tpu.memory_space<vmem>>, vector<1x379xf32>,
    %48 = vector.extract_strided_slice %46 {offsets = [0, 19], sizes = [1, 358], strides = [1, 1]} : vector<1x379xf32> to vector<1x358xf32>
    %c6 = arith.constant 6 : index
    %c0_15 = arith.constant 0 : index
    %49 = vector.load %arg5[%c6, %c0_15] : memref<9x379xf32, #tpu.memory_space<vmem>>, vector<1x358xf32>
    tpu.vector_store %arg5[%c6, %c0_15], %48 {strides = array<i32>} : memref<9x379xf32, #tpu.memory_space<vmem>>, vector<1x358xf32>,
    %50 = vector.extract_strided_slice %25 {offsets = [0, 20], sizes = [4, 379], strides = [1, 1]} : vector<4x400xf32> to vector<4x379xf32>
    %51 = arith.mulf %28, %50 : vector<4x379xf32>
    %cst_16 = arith.constant dense<0.000000e+00> : vector<379xf32>
    %52 = vector.multi_reduction <add>, %51, %cst_16 [0] : vector<4x379xf32> to vector<379xf32>
    %53 = vector.shape_cast %52 : vector<379xf32> to vector<1x379xf32>
    %c3 = arith.constant 3 : index
    %c0_17 = arith.constant 0 : index
    %54 = vector.load %arg5[%c3, %c0_17] : memref<9x379xf32, #tpu.memory_space<vmem>>, vector<1x379xf32>
    tpu.vector_store %arg5[%c3, %c0_17], %53 {strides = array<i32>} : memref<9x379xf32, #tpu.memory_space<vmem>>, vector<1x379xf32>,
    %55 = vector.extract_strided_slice %53 {offsets = [0, 1], sizes = [1, 358], strides = [1, 1]} : vector<1x379xf32> to vector<1x358xf32>
    %c5 = arith.constant 5 : index
    %c0_18 = arith.constant 0 : index
    %56 = vector.load %arg5[%c5, %c0_18] : memref<9x379xf32, #tpu.memory_space<vmem>>, vector<1x358xf32>
    tpu.vector_store %arg5[%c5, %c0_18], %55 {strides = array<i32>} : memref<9x379xf32, #tpu.memory_space<vmem>>, vector<1x358xf32>,
    %57 = vector.extract_strided_slice %25 {offsets = [0, 21], sizes = [4, 379], strides = [1, 1]} : vector<4x400xf32> to vector<4x379xf32>
    %58 = arith.mulf %28, %57 : vector<4x379xf32>
    %cst_19 = arith.constant dense<0.000000e+00> : vector<379xf32>
    %59 = vector.multi_reduction <add>, %58, %cst_19 [0] : vector<4x379xf32> to vector<379xf32>
    %60 = vector.shape_cast %59 : vector<379xf32> to vector<1x379xf32>
    %c4 = arith.constant 4 : index
    %c0_20 = arith.constant 0 : index
    %61 = vector.load %arg5[%c4, %c0_20] : memref<9x379xf32, #tpu.memory_space<vmem>>, vector<1x379xf32>
    tpu.vector_store %arg5[%c4, %c0_20], %60 {strides = array<i32>} : memref<9x379xf32, #tpu.memory_space<vmem>>, vector<1x379xf32>,
    %c0_21 = arith.constant 0 : index
    %c0_22 = arith.constant 0 : index
    %62 = vector.load %arg5[%c0_21, %c0_22] : memref<9x379xf32, #tpu.memory_space<vmem>>, vector<9x379xf32>
    %63 = vector.extract_strided_slice %62 {offsets = [0, 0], sizes = [9, 356], strides = [1, 1]} : vector<9x379xf32> to vector<9x356xf32>
    %64 = vector.extract_strided_slice %62 {offsets = [0, 1], sizes = [9, 356], strides = [1, 1]} : vector<9x379xf32> to vector<9x356xf32>
    %65 = arith.addf %63, %64 : vector<9x356xf32>
    %66 = vector.extract_strided_slice %62 {offsets = [0, 2], sizes = [9, 356], strides = [1, 1]} : vector<9x379xf32> to vector<9x356xf32>
    %67 = arith.addf %65, %66 : vector<9x356xf32>
    %68 = vector.extract_strided_slice %67 {offsets = [0, 0], sizes = [9, 316], strides = [1, 1]} : vector<9x356xf32> to vector<9x316xf32>
    %69 = vector.extract_strided_slice %67 {offsets = [0, 20], sizes = [9, 316], strides = [1, 1]} : vector<9x356xf32> to vector<9x316xf32>
    %70 = arith.addf %68, %69 : vector<9x316xf32>
    %71 = vector.extract_strided_slice %67 {offsets = [0, 40], sizes = [9, 316], strides = [1, 1]} : vector<9x356xf32> to vector<9x316xf32>
    %72 = arith.addf %70, %71 : vector<9x316xf32>
    %c0_23 = arith.constant 0 : index
    %c0_24 = arith.constant 0 : index
    %73 = vector.load %arg3[%c0_23, %c0_24] : memref<9x316xbf16, #tpu.memory_space<vmem>>, vector<9x316xbf16>
    %74 = arith.extf %73 : vector<9x316xbf16> to vector<9x316xf32>
    %75 = arith.mulf %72, %74 : vector<9x316xf32>
    %cst_25 = arith.constant dense<0xFF800000> : vector<316xf32>
    %76 = vector.multi_reduction <maximumf>, %75, %cst_25 [0] : vector<9x316xf32> to vector<316xf32>
    %77 = vector.shape_cast %76 : vector<316xf32> to vector<1x316xf32>
    %78 = vector.broadcast %77 : vector<1x316xf32> to vector<9x316xf32>
    %79 = arith.subf %75, %78 : vector<9x316xf32>
    %80 = math.exp %79 : vector<9x316xf32>
    %cst_26 = arith.constant dense<0.000000e+00> : vector<316xf32>
    %81 = vector.multi_reduction <add>, %80, %cst_26 [0] : vector<9x316xf32> to vector<316xf32>
    %82 = vector.shape_cast %81 : vector<316xf32> to vector<1x316xf32>
    %83 = tpu.reciprocal %82 : vector<1x316xf32> -> vector<1x316xf32>
    %84 = vector.broadcast %83 : vector<1x316xf32> to vector<9x316xf32>
    %85 = arith.mulf %80, %84 : vector<9x316xf32>
    %c0_27 = arith.constant 0 : index
    %c0_28 = arith.constant 0 : index
    %c0_29 = arith.constant 0 : index
    %86 = vector.load %arg4[%c0_27, %c0_28, %c0_29] : memref<1x9x316xf32, #tpu.memory_space<vmem>>, vector<1x9x316xf32>
    %87 = vector.shape_cast %86 : vector<1x9x316xf32> to vector<9x316xf32>
    %88 = vector.shape_cast %85 : vector<9x316xf32> to vector<1x9x316xf32>
    tpu.vector_store %arg4[%c0_27, %c0_28, %c0_29], %88 {strides = array<i32>} : memref<1x9x316xf32, #tpu.memory_space<vmem>>, vector<1x9x316xf32>,
    return
  }
  func.func @transform_0(%arg0: i32) -> (i32, i32) {
    %c0_i32 = arith.constant 0 : i32
    %c0_i32_0 = arith.constant 0 : i32
    %c0_i32_1 = arith.constant 0 : i32
    return %c0_i32, %c0_i32_0 : i32, i32
  }
  func.func @transform_1(%arg0: i32) -> (i32, i32, i32) {
    %c0_i32 = arith.constant 0 : i32
    %c0_i32_0 = arith.constant 0 : i32
    %c0_i32_1 = arith.constant 0 : i32
    return %arg0, %c0_i32, %c0_i32_0 : i32, i32, i32
  }
  func.func @transform_2(%arg0: i32) -> (i32, i32) {
    %c0_i32 = arith.constant 0 : i32
    %c0_i32_0 = arith.constant 0 : i32
    %c0_i32_1 = arith.constant 0 : i32
    return %c0_i32, %c0_i32_0 : i32, i32
  }
  func.func @transform_3(%arg0: i32) -> (i32, i32, i32) {
    %c0_i32 = arith.constant 0 : i32
    %c0_i32_0 = arith.constant 0 : i32
    %c0_i32_1 = arith.constant 0 : i32
    return %arg0, %c0_i32, %c0_i32_0 : i32, i32, i32
  }
}

</mosaic_0001>

<bundles_post_ra>
// kernel: tpu_custom_call.1
= control target key start
LH: loop header
LB: loop body
LE: loop exit
PB: predicated region body
PF: predicated region fallthrough
CT: control target
= control target key end

     0   :  { %8 = vsyncpa [#allocation4], 0  ;;  %s1935_s0 = inlined_call_operand.hbm [shape: f32[4,4], index: 0, kind: input, shape index: {}]   ;;  %s1936_s1 = inlined_call_operand.hbm [shape: f32[2,4,400], index: 1, kind: input, shape index: {}]   ;;  %s1937_s2 = inlined_call_operand.hbm [shape: bf16[9,316], index: 2, kind: input, shape index: {}]   ;;  %s1938_s3 = inlined_call_operand.vmem [shape: f32[2,9,316], index: 3, kind: output, shape index: {}]  }
   0x1   :  { %9 = vsyncpa [#allocation6], 0 }
   0x2   :  { %11 = vsyncpa [#allocation6 + $0x1], 0  ;;  %s1493_s12 = smov 0   ;;  %s1495_s13 = smov 0  }
   0x3   :  { %s1497_s14 = smov 0   ;;  %s1499_s15 = smov 0  }
   0x4 LB: > { %s1512_s16 = sadd.s32 4294967295, %s1448_s15   ;;  %p58_p0 = scmp.ne.s32.totalorder %s1440_s13, %s1436_s12  ;;  %s1448_s15 = sphi %s1499_s15, %s1959_s15   ;;  %s1444_s14 = sphi %s1497_s14, %s1958_s14   ;;  %s1440_s13 = sphi %s1495_s13, %s1957_s13   ;;  %s1436_s12 = sphi %s1493_s12, %s1956_s12  }
   0x5   : > { %p1939_p1 = scmp.eq.s32.totalorder %s1512_s16, 0  ;;  %p1201_p2 = scmp.ge.s32.totalorder %s1448_s15, 1 }
   0x6   : > { %p116_p3 = scmp.lt.s32.totalorder %s1448_s15, 3  ;;  %s1450_s19 = smov [#allocation7]  }
   0x7   : > { %p1520_p4 = por %p1939_p1, %p58_p0  ;;  %s139_s20 = sshll.u32 %s1450_s19, 4  ;;  %s140_s20 = int_to_ptr.vmem [resolvable:$true] %s139_s20 }
   0x8   : > { %p1524_p5 = pnand %p1201_p2, %p116_p3  ;;  %s1451_s22 = smov [#allocation3]  }
   0x9   : > { %s1942_s17 = scalar_select %p1520_p4, 1, 0 }
   0xa   : > { %s1943_s18 = scalar_select %p1524_p5, 1, 0 }
   0xb   : > { %p1227_p6 = pneg %p1524_p5  ;;  %s129_s23 = sshll.u32 %s1451_s22, 4  ;;  %s1536_s23 = int_to_ptr.vmem [resolvable:$true] %s129_s23 }
   0xc   : > { %s1320_s26 = scalar_lea.hbm %s1937_s2, 384 }
   0xd   : > { %p1532_p7 = pnand %p1227_p6, %p1939_p1  ;;  %p1321_p8 = scmp.ne.s32.totalorder %s1937_s2, %s1320_s26 }
   0xe   : > { %p1327_p12 = scmp.lt.u32.totalorder %s1320_s26, %s1937_s2 }
   0xf   : > { %p1322_p9 = pneg %p1532_p7 }
  0x11   : > { %p1323_p10 = pnand %p1322_p9, %p1321_p8 }
  0x13   : > { %p1324_p11 = pneg %p1323_p10 }
  0x15   : > { %p1329_p13 = pnand %p1327_p12, %p1324_p11 }
  0x17   : > { %1332 = shalt.err (!%p1329_p13)
}
  0x18   : > { %s1333_s4 = scalar_lea.vmem %s140_s20, 384  ;;  %p1341_p6 = scmp.lt.s32.totalorder %s140_s20, %s140_s20 }
  0x19   : > { %p1334_p0 = scmp.ne.s32.totalorder %s140_s20, %s1333_s4  ;;  %p1342_p1 = scmp.lt.s32.totalorder %s1333_s4, %s1333_s4 }
  0x1b   : > { %p1336_p2 = pnand %p1334_p0, %p1322_p9  ;;  %p1343_p4 = por %p1342_p1, %p1341_p6 }
  0x1d   : > { %p1337_p3 = pneg %p1336_p2 }
  0x1f   : > { %p1344_p5 = pnand %p1343_p4, %p1337_p3 }
  0x21   : > { %1347 = shalt.err (!%p1344_p5)
}
  0x22   : > { %s1452_s5 = smov 192   ;;  %s1453_s6 = smov 12  }
  0x23   : > { %1233 = dma.hbm_to_vmem [thread:$0]  (!%p1532_p7), %s1937_s2, 384, %s140_s20, [#allocation6], %s1452_s5, %s1452_s5, %s1453_s6  }
  0x24   : > { %s1348_s11 = scalar_lea.hbm %s1935_s0, 64 }
  0x25   : > { %p1349_p8 = scmp.ne.s32.totalorder %s1935_s0, %s1348_s11  ;;  %p1355_p5 = scmp.lt.u32.totalorder %s1348_s11, %s1935_s0 }
  0x27   : > { %p1351_p1 = pnand %p1349_p8, %p1322_p9 }
  0x29   : > { %p1352_p4 = pneg %p1351_p1 }
  0x2b   : > { %p1357_p10 = pnand %p1355_p5, %p1352_p4 }
  0x2d   : > { %1360 = shalt.err (!%p1357_p10)
}
  0x2e   : > { %s1361_s20 = scalar_lea.vmem %s1536_s23, 64  ;;  %p1369_p0 = scmp.lt.s32.totalorder %s1536_s23, %s1536_s23 }
  0x2f   : > { %p1362_p11 = scmp.ne.s32.totalorder %s1536_s23, %s1361_s20  ;;  %p1370_p2 = scmp.lt.s32.totalorder %s1361_s20, %s1361_s20 }
  0x31   : > { %p1364_p12 = pnand %p1362_p11, %p1322_p9  ;;  %p1371_p3 = por %p1370_p2, %p1369_p0 }
  0x33   : > { %p1365_p13 = pneg %p1364_p12 }
  0x35   : > { %p1372_p6 = pnand %p1371_p3, %p1365_p13 }
  0x37   : > { %1375 = shalt.err (!%p1372_p6)
}
  0x38   : > { %1230 = dma.hbm_to_vmem [thread:$0]  (!%p1532_p7), %s1935_s0, 64, %s1536_s23, [#allocation4]  }
  0x39   : > { %s1586_s27 = sadd.s32 1, %s1448_s15   ;;  %s45_s21 = sadd.s32 1, %s1444_s14 }
  0x3a   : > { %s42_s28 = ssub.s32 %s1448_s15, %s1586_s27  ;;  %p52_p9 = scmp.ne.s32.totalorder %s1444_s14, %s1440_s13 }
  0x3b   : > { %p43_p8 = scmp.eq.s32.totalorder %s42_s28, 0  ;;  %p53_p1 = scmp.eq.s32.totalorder %s1448_s15, 0 }
  0x3c   : > { %p1240_p4 = scmp.lt.s32.totalorder %s1448_s15, 2  ;;  %s153_s29 = sand.u32 1, %s1448_s15  }
  0x3d   : > { %s1597_s30 = scalar_select %p43_p8, %s1444_s14, %s45_s21  }
  0x3e   : > { %p54_p5 = por %p53_p1, %p52_p9  ;;  %s155_s4 = sand.u32 1, %s1444_s14  }
  0x3f   : > { %s1215_s5 = sshll.u32 %s1448_s15, 8  ;;  %s1205_s6 = sshll.u32 %s155_s4, 4 }
  0x40   : > { %s1604_s23 = scalar_lea.hbm %s1936_s1, %s1215_s5  ;;  %p1606_p7 = pnand %p1240_p4, %p54_p5 }
  0x41   : > { %s157_s10 = scalar_lea.vmem [#allocation5], %s1205_s6  ;;  %s154_s15 = scalar_lea.sflag [#allocation6], %s153_s29 }
  0x42   : > { %s165_s11 = sshll.u32 %s157_s10, 4  ;;  %s1376_s12 = scalar_lea.hbm %s1604_s23, 256  ;;  %s1610_s11 = int_to_ptr.vmem [resolvable:$true] %s165_s11 }
  0x43   : > { %p1377_p10 = scmp.ne.s32.totalorder %s1604_s23, %s1376_s12  ;;  %p1378_p11 = pneg %p1606_p7 }
  0x44   : > { %s1381_s24 = scalar_lea.hbm %s1936_s1, 512  ;;  %p1382_p0 = scmp.lt.u32.totalorder %s1604_s23, %s1936_s1 }
  0x45   : > { %p1379_p12 = pnand %p1378_p11, %p1377_p10  ;;  %p1383_p2 = scmp.lt.u32.totalorder %s1381_s24, %s1376_s12 }
  0x46   : > { %p1385_p6 = scmp.lt.u32.totalorder %s1376_s12, %s1604_s23 }
  0x47   : > { %p1380_p13 = pneg %p1379_p12  ;;  %p1384_p3 = por %p1383_p2, %p1382_p0 }
  0x49   : > { %p1386_p9 = por %p1385_p6, %p1384_p3 }
  0x4b   : > { %p1387_p8 = pnand %p1386_p9, %p1380_p13 }
  0x4d   : > { %1390 = shalt.err (!%p1387_p8)
}
  0x4e   : > { %s1391_s26 = scalar_lea.vmem %s1610_s11, 256  ;;  %s1454_s21 = smov [#allocation5]  }
  0x4f   : > { %p1392_p1 = scmp.ne.s32.totalorder %s1610_s11, %s1391_s26  ;;  %s1396_s28 = sshll.u32 %s1454_s21, 4  ;;  %s1397_s28 = int_to_ptr.vmem [resolvable:$false] %s1396_s28 }
  0x50   : > { %s1398_s29 = scalar_lea.vmem %s1397_s28, 512  ;;  %p1399_p10 = scmp.lt.s32.totalorder %s1610_s11, %s1397_s28 }
  0x51   : > { %p1394_p4 = pnand %p1392_p1, %p1378_p11  ;;  %p1400_p12 = scmp.lt.s32.totalorder %s1398_s29, %s1391_s26 }
  0x53   : > { %p1395_p5 = pneg %p1394_p4  ;;  %p1401_p0 = por %p1400_p12, %p1399_p10 }
  0x55   : > { %p1402_p2 = pnand %p1401_p0, %p1395_p5 }
  0x57   : > { %1405 = shalt.err (!%p1402_p2)
}
  0x58   : > { %1237 = dma.hbm_to_vmem [thread:$0]  (!%p1606_p7), %s1604_s23, 256, %s1610_s11, %s154_s15  }
  0x59   : > { %p1946_p13 = scmp.ne.s32.totalorder %s1943_s18, 0 }
  0x5a   : > { %p1947_p11 = scmp.eq.s32.totalorder (!%p1946_p13), %s1512_s16, 0 }
  0x5b   : > { %174 = sbr.rel (%p1946_p13) target bundleno = 884 (0x374), region = 32 }
  0x62   : > { %1423 = dma.done.wait (%p1947_p11), [#allocation4], 64   ;;  %p1948_p3 = pmov %p1947_p11 }
  0x63   : > { %s180_s4 = sand.u32 1, %s1512_s16   ;;  %s182_s5 = sand.u32 1, %s1440_s13  }
  0x64   : > { %1425 = vsyncadd (%p1948_p3), [#allocation4], 4294967232  ;;  %s1210_s6 = sshll.u32 %s182_s5, 4  ;;  %s181_s7 = scalar_lea.sflag [#allocation6], %s180_s4 }
  0x65   : > { %s184_s8 = scalar_lea.vmem [#allocation5], %s1210_s6  ;;  %p1949_p6 = scmp.ne.s32.totalorder %s1942_s17, 0 }
  0x67   : > { %1427 = dma.done.wait (%p1949_p6), %s181_s7, 256  }
  0x68   : > { %1429 = vsyncadd (%p1949_p6), %s181_s7, 4294967040  ;;  %p1950_p7 = pmov %p1948_p3 }
  0x69   : > { %p1951_p9 = pmov %p1948_p3 }
  0x6a   : > { %1431 = dma.done.wait (%p1950_p7), [#allocation6], 384  }
  0x6b   : > { %1433 = vsyncadd (%p1951_p9), [#allocation6], 4294966912  ;;  %v1455_v0 = vmov 0   ;;  %v1456_v1 = vmov 2   ;;  %v218_v2 = vld [vmem:[#allocation3] sm:$0xf]  ;;  %v226_v5 = vlaneseq }
  0x6c   : > { %1297 = vset.pattern.permute.xlu0 %v1455_v0  ;;  %1299 = vset.pattern.permute.xlu1 %v1456_v1  ;;  %v1457_v3 = vmov 1   ;;  %v1458_v4 = vmov 3   ;;  %v216_v9 = vld [vmem:[%s184_s8] sm:$0xff]  ;;  %v1664_v12 = vld [vmem:[%s184_s8 + $0x8] sm:$0xff]  ;;  %s1459_s17 = smov 21   ;;  %s1460_s18 = smov 20  }
  0x6d   : > { %221 = vperm.xlu0 %1297, %v218_v2   ;;  %315 = vperm.xlu1 %1299, %v218_v2   ;;  %v1654_v6 = vshrl.u32 %v226_v5, 7  ;;  %s1461_s23 = smov 19   ;;  %s1462_s9 = smov 1   ;;  %vm416_vm0 = vcmask 999424   ;;  %vm438_vm1 = vcmask 1043624   ;;  %vm446_vm2 = vcmask 1043456  }
  0x6e   : > { %vm461_vm3 = vcmask 125952   ;;  %vm427_vm4 = vcmask 171008   ;;  %vm526_vm5 = vcmask 162816   ;;  %vm616_vm6 = vcmask 154624   ;;  %s1465_s10 = smov 107   ;;  %s1466_s11 = smov 86  }
  0x6f   : > { %v1657_v7 = vsub.s32 0, %v1654_v6  ;;  %v232_v8 = vsub.s32 4, %v1654_v6  ;;  %v1661_v10 = vsub.s32 1, %v1654_v6  ;;  %v276_v11 = vsub.s32 5, %v1654_v6  ;;  %s1467_s15 = smov 87   ;;  %s1468_s12 = smov 88  }
  0x70   : > { %v1667_v13 = vsub.s32 2, %v1654_v6  ;;  %v324_v14 = vsub.s32 6, %v1654_v6  ;;  %v1671_v15 = vsub.s32 3, %v1654_v6  ;;  %v372_v16 = vsub.s32 7, %v1654_v6  ;;  %s1469_s19 = smov 106   ;;  %s1470_s22 = smov 127  }
  0x71   : > { %1298 = vset.pattern.permute.xlu0 %v1457_v3  ;;  %1300 = vset.pattern.permute.xlu1 %v1458_v4  ;;  %v229_v17 = vrot.slane %v216_v9, %v1657_v7  ;;  %v233_v18 = vrot.slane %v216_v9, %v232_v8  ;;  %v237_v19 = vrot.slane %v1664_v12, %v1657_v7  ;;  %vm709_vm7 = vcmask 7168   ;;  %s1471_s24 = smov 126   ;;  %s1472_s20 = smov 108  }
  0x72   : > { %267 = vperm.xlu0 %1298, %v218_v2   ;;  %363 = vperm.xlu1 %1300, %v218_v2   ;;  %v273_v20 = vrot.slane %v216_v9, %v1661_v10  ;;  %v277_v21 = vrot.slane %v216_v9, %v276_v11  ;;  %v281_v22 = vrot.slane %v1664_v12, %v1661_v10  ;;  %vm412_vm8 = vcmask 1006592   ;;  %p211_p8 = scmp.lt.s32.totalorder %s1512_s16, 1 }
  0x73   : > { %v321_v23 = vrot.slane %v216_v9, %v1667_v13  ;;  %v325_v24 = vrot.slane %v216_v9, %v324_v14  ;;  %v369_v25 = vrot.slane %v216_v9, %v1671_v15  ;;  %v373_v28 = vrot.slane %v216_v9, %v372_v16 }
  0x74   : > { %v249_v29 = vrot.slane %v229_v17, %v1657_v7  ;;  %v253_v30 = vrot.slane %v233_v18, %v1657_v7  ;;  %v329_v31 = vrot.slane %v1664_v12, %v1667_v13  ;;  %v257_v32 = vrot.slane %v237_v19, %v1657_v7  ;;  %s1961_s16 = smov (!%p211_p8, %s1512_s16), 1 }
  0x75   : > { %v293_v33 = vrot.slane %v273_v20, %v1661_v10  ;;  %v297_v34 = vrot.slane %v277_v21, %v1661_v10  ;;  %v301_v35 = vrot.slane %v281_v22, %v1661_v10  ;;  %v341_v36 = vrot.slane %v321_v23, %v1667_v13  ;;  %s1216_s25 = smul.u32 48, %s1961_s16 }
  0x76   : > { %1301 = vset.pattern.permute.xlu0 %v1458_v4  ;;  %v345_v37 = vrot.slane %v325_v24, %v1667_v13  ;;  %v377_v38 = vrot.slane %v1664_v12, %v1671_v15  ;;  %v389_v39 = vrot.slane %v369_v25, %v1671_v15  ;;  %v393_v40 = vrot.slane %v373_v28, %v1671_v15 }
  0x77   : > { %v349_v43 = vrot.slane %v329_v31, %v1667_v13  ;;  %v285_v1 = vrot.slane %v1664_v12, %v276_v11  ;;  %v241_v3 = vrot.slane %v1664_v12, %v232_v8  ;;  %v333_v17 = vrot.slane %v1664_v12, %v324_v14  ;;  %s215_s28 = scalar_lea.vmem %s1938_s3, %s1216_s25 }
  0x78   : > { %v397_v52 = vrot.slane %v377_v38, %v1671_v15  ;;  %v381_v8 = vrot.slane %v1664_v12, %v372_v16  ;;  %v1464_v38 = vmov 1966171168   ;;  %vm512_vm9 = vcmask 703488  }
  0x79   : > { %v305_v4 = vrot.slane %v285_v1, %v1661_v10  ;;  %v261_v9 = vrot.slane %v241_v3, %v1657_v7  ;;  %v353_v19 = vrot.slane %v333_v17, %v1667_v13  ;;  %v1463_v13 = vmov 0.0  }
  0x7a   : > { %v401_v10 = vrot.slane %v381_v8, %v1671_v15  ;;  %414 = vst [vmem:[#allocation2 + $0x18] sm:$0x1] %v1463_v13  ;;  %415 = vst [vmem:[#allocation2 + $0x20] sm:$0x1] %v1463_v13  ;;  %vm500_vm10 = vcmask 875520   ;;  %vm1847_vm11 = vcmp.lt.s32.totalorder %v226_v5, 358 }
  0x7b   : > { %417 = vst.msk [vmem:[#allocation2 + $0x28] sm:$0x1] %vm416_vm0, %v1463_v13  ;;  %410 = vst [vmem:[#allocation2] sm:$0xff] %v1463_v13  ;;  %vm1852_vm12 = vcmp.lt.s32.totalorder %v226_v5, 379  ;;  %vm604_vm13 = vcmask 711680   ;;  %vm694_vm14 = vcmask 719872  }
  0x7c   : > { %411 = vst [vmem:[#allocation2 + $0x8] sm:$0xff] %v1463_v13  ;;  %413 = vst.msk [vmem:[#allocation2 + $0x10] sm:$0xff] %vm412_vm8, %v1463_v13  ;;  %vm803_vm15 = vcmask 867328   ;;  %vm901_vm0 = vcmask 1039360  }
  0xec   : > { %v222_v26 = vpop.permute.xlu0 %221  ;;  %v316_v27 = vpop.permute.xlu1 %315 }
  0xed   : > { %v262_v41 = vmul.f32 %v249_v29, %v222_v26  ;;  %v263_v42 = vmul.f32 %v253_v30, %v222_v26  ;;  %v264_v46 = vmul.f32 %v257_v32, %v222_v26  ;;  %v354_v50 = vmul.f32 %v341_v36, %v316_v27 }
  0xee   : > { %v355_v51 = vmul.f32 %v345_v37, %v316_v27  ;;  %v356_v58 = vmul.f32 %v349_v43, %v316_v27  ;;  %v265_v18 = vmul.f32 %v261_v9, %v222_v26  ;;  %v357_v14 = vmul.f32 %v353_v19, %v316_v27 }
  0xf1   : > { %v268_v44 = vpop.permute.xlu0 %267  ;;  %v364_v45 = vpop.permute.xlu1 %363 }
  0xf2   : > { %v306_v47 = vmul.f32 %v293_v33, %v268_v44  ;;  %v307_v48 = vmul.f32 %v297_v34, %v268_v44  ;;  %v308_v49 = vmul.f32 %v301_v35, %v268_v44  ;;  %v402_v53 = vmul.f32 %v389_v39, %v364_v45 }
  0xf3   : > { %v403_v57 = vmul.f32 %v393_v40, %v364_v45  ;;  %v404_v62 = vmul.f32 %v397_v52, %v364_v45  ;;  %v309_v11 = vmul.f32 %v305_v4, %v268_v44  ;;  %v405_v21 = vmul.f32 %v401_v10, %v364_v45 }
  0xf4   : > { %v310_v54 = vadd.f32 %v306_v47, %v262_v41  ;;  %v311_v55 = vadd.f32 %v307_v48, %v263_v42  ;;  %v312_v56 = vadd.f32 %v308_v49, %v264_v46  ;;  %v476_v39 = vunpack.c.l.s4 %v1464_v38 }
  0xf5   : > { %v313_v7 = vadd.f32 %v309_v11, %v265_v18 }
  0xf6   : > { %v358_v59 = vadd.f32 %v354_v50, %v310_v54  ;;  %v359_v60 = vadd.f32 %v355_v51, %v311_v55  ;;  %v360_v61 = vadd.f32 %v356_v58, %v312_v56  ;;  %v477_v44 = vunpack.c.0.s8 %v476_v39 }
  0xf7   : > { %v361_v20 = vadd.f32 %v357_v14, %v313_v7 }
  0xf8   : > { %v1700_v63 = vadd.f32 %v402_v53, %v358_v59  ;;  %v1702_v0 = vadd.f32 %v403_v57, %v359_v60  ;;  %v1707_v2 = vadd.f32 %v404_v62, %v360_v61  ;;  %v1752_v54 = vsub.s32 %v477_v44, %v1654_v6 }
  0xf9   : > { %v1728_v12 = vadd.f32 %v405_v21, %v361_v20 }
  0xfa   : > { %423 = vrot.lane.b32.xlu0 %v1702_v0, %s1459_s17  ;;  %421 = vrot.lane.b32.xlu1 %v1700_v63, %s1459_s17  ;;  %v809_v15 = vmul.f32 %v1700_v63, %v1700_v63  ;;  %v810_v16 = vmul.f32 %v1702_v0, %v1702_v0  ;;  %v811_v23 = vmul.f32 %v1707_v2, %v1707_v2 }
  0xfb   : > { %v812_v22 = vmul.f32 %v1728_v12, %v1728_v12 }
  0xfc   : > { %v813_v24 = vsel %vm438_vm1, %v809_v15, 0.0  ;;  %v820_v25 = vsel %vm446_vm2, %v810_v16, 0.0  ;;  %v827_v27 = vsel %vm446_vm2, %v811_v23, 0.0 }
  0xfd   : > { %v834_v26 = vsel %vm461_vm3, %v812_v22, 0.0  ;;  %v814_v28 = vrot.slane %v813_v24, 4  ;;  %v821_v29 = vrot.slane %v820_v25, 4  ;;  %v828_v31 = vrot.slane %v827_v27, 4 }
  0xfe   : > { %520 = vrot.lane.b32.xlu0 %v1700_v63, %s1460_s18  ;;  %425 = vrot.lane.b32.xlu1 %v1707_v2, %s1459_s17  ;;  %v835_v30 = vrot.slane %v834_v26, 4 }
  0xff   : > { %v815_v32 = vadd.f32 %v814_v28, %v813_v24  ;;  %v822_v33 = vadd.f32 %v821_v29, %v820_v25  ;;  %v829_v35 = vadd.f32 %v828_v31, %v827_v27 }
 0x100   : > { %v836_v34 = vadd.f32 %v835_v30, %v834_v26 }
 0x101   : > { %v816_v36 = vrot.slane %v815_v32, 2  ;;  %v823_v37 = vrot.slane %v822_v33, 2  ;;  %v830_v41 = vrot.slane %v829_v35, 2 }
 0x102   : > { %524 = vrot.lane.b32.xlu0 %v1707_v2, %s1460_s18  ;;  %522 = vrot.lane.b32.xlu1 %v1702_v0, %s1460_s18  ;;  %v837_v40 = vrot.slane %v836_v34, 2 }
 0x103   : > { %v817_v42 = vadd.f32 %v816_v36, %v815_v32  ;;  %v824_v43 = vadd.f32 %v823_v37, %v822_v33  ;;  %v831_v48 = vadd.f32 %v830_v41, %v829_v35 }
 0x104   : > { %v838_v45 = vadd.f32 %v837_v40, %v836_v34 }
 0x105   : > { %v818_v52 = vrot.slane %v817_v42, 1  ;;  %v825_v53 = vrot.slane %v824_v43, 1  ;;  %v832_v61 = vrot.slane %v831_v48, 1 }
 0x106   : > { %612 = vrot.lane.b32.xlu0 %v1702_v0, %s1461_s23  ;;  %610 = vrot.lane.b32.xlu1 %v1700_v63, %s1461_s23  ;;  %v839_v56 = vrot.slane %v838_v45, 1 }
 0x107   : > { %v1760_v17 = vadd.f32 %v818_v52, %v817_v42  ;;  %v1762_v11 = vadd.f32 %v825_v53, %v824_v43 }
 0x108   : > { %v1766_v7 = vadd.f32 %v839_v56, %v838_v45 }
 0x10a   : > { %701 = vrot.lane.b32.xlu0 %v1700_v63, %s1462_s9  ;;  %614 = vrot.lane.b32.xlu1 %v1707_v2, %s1461_s23 }
 0x10e   : > { %705 = vrot.lane.b32.xlu0 %v1707_v2, %s1462_s9  ;;  %703 = vrot.lane.b32.xlu1 %v1702_v0, %s1462_s9 }
 0x112   : > { %707 = vrot.lane.b32.xlu1 %v1728_v12, %s1462_s9 }
 0x16c   : > { %v424_v46 = vpop.permute.xlu0 %423  ;;  %v422_v47 = vpop.permute.xlu1 %421 }
 0x16d   : > { %v428_v49 = vsel %vm427_vm4, %v422_v47, %v424_v46  ;;  %v434_v50 = vmul.f32 %v422_v47, %v1700_v63  ;;  %v1776_v47 = vadd.f32 %v832_v61, %v831_v48 }
 0x16e   : > { %v435_v51 = vmul.f32 %v428_v49, %v1702_v0 }
 0x16f   : > { %v439_v55 = vsel %vm438_vm1, %v434_v50, 0.0  ;;  %v846_v13 = vcombine.low %v1776_v47, %v1766_v7 }
 0x170   : > { %v440_v57 = vrot.slane %v439_v55, 4  ;;  %v447_v58 = vsel %vm446_vm2, %v435_v51, 0.0  ;;  %v521_v59 = vpop.permute.xlu0 %520  ;;  %v426_v60 = vpop.permute.xlu1 %425 }
 0x171   : > { %v448_v62 = vrot.slane %v447_v58, 4  ;;  %v533_v1 = vmul.f32 %v521_v59, %v1700_v63  ;;  %v429_v3 = vsel %vm427_vm4, %v424_v46, %v426_v60  ;;  %v437_v4 = vmul.f32 %v426_v60, %v1728_v12 }
 0x172   : > { %v441_v9 = vadd.f32 %v440_v57, %v439_v55  ;;  %v436_v6 = vmul.f32 %v429_v3, %v1707_v2  ;;  %vm1045_vm4 = vcmask 483328  }
 0x173   : > { %v449_v8 = vadd.f32 %v448_v62, %v447_v58  ;;  %v537_v18 = vsel %vm438_vm1, %v533_v1, 0.0  ;;  %v462_v19 = vsel %vm461_vm3, %v437_v4, 0.0 }
 0x174   : > { %v442_v10 = vrot.slane %v441_v9, 2  ;;  %v538_v14 = vrot.slane %v537_v18, 4  ;;  %v454_v20 = vsel %vm446_vm2, %v436_v6, 0.0  ;;  %v463_v21 = vrot.slane %v462_v19, 4  ;;  %v525_v15 = vpop.permute.xlu0 %524  ;;  %v523_v16 = vpop.permute.xlu1 %522 }
 0x175   : > { %v450_v22 = vrot.slane %v449_v8, 2  ;;  %v455_v23 = vrot.slane %v454_v20, 4  ;;  %v536_v24 = vmul.f32 %v525_v15, %v1728_v12  ;;  %v527_v25 = vsel %vm526_vm5, %v521_v59, %v523_v16 }
 0x176   : > { %v443_v26 = vadd.f32 %v442_v10, %v441_v9  ;;  %v539_v27 = vadd.f32 %v538_v14, %v537_v18  ;;  %v464_v28 = vadd.f32 %v463_v21, %v462_v19  ;;  %v528_v29 = vsel %vm526_vm5, %v523_v16, %v525_v15 }
 0x177   : > { %v451_v30 = vadd.f32 %v450_v22, %v449_v8  ;;  %v456_v31 = vadd.f32 %v455_v23, %v454_v20  ;;  %v558_v32 = vsel %vm461_vm3, %v536_v24, 0.0  ;;  %v534_v33 = vmul.f32 %v527_v25, %v1702_v0 }
 0x178   : > { %v444_v34 = vrot.slane %v443_v26, 1  ;;  %v540_v35 = vrot.slane %v539_v27, 2  ;;  %v465_v36 = vrot.slane %v464_v28, 2  ;;  %v559_v37 = vrot.slane %v558_v32, 4  ;;  %v613_v38 = vpop.permute.xlu0 %612  ;;  %v611_v39 = vpop.permute.xlu1 %610 }
 0x179   : > { %v452_v40 = vrot.slane %v451_v30, 1  ;;  %v457_v41 = vrot.slane %v456_v31, 2  ;;  %v535_v42 = vmul.f32 %v528_v29, %v1707_v2  ;;  %v544_v43 = vsel %vm446_vm2, %v534_v33, 0.0 }
 0x17a   : > { %v541_v44 = vadd.f32 %v540_v35, %v539_v27  ;;  %v466_v45 = vadd.f32 %v465_v36, %v464_v28  ;;  %v560_v46 = vadd.f32 %v559_v37, %v558_v32  ;;  %v1778_v49 = vadd.f32 %v444_v34, %v443_v26 }
 0x17b   : > { %v458_v50 = vadd.f32 %v457_v41, %v456_v31  ;;  %v545_v51 = vrot.slane %v544_v43, 4  ;;  %v551_v52 = vsel %vm446_vm2, %v535_v42, 0.0  ;;  %v1781_v59 = vadd.f32 %v452_v40, %v451_v30 }
 0x17c   : > { %v542_v53 = vrot.slane %v541_v44, 1  ;;  %v467_v55 = vrot.slane %v466_v45, 1  ;;  %v561_v56 = vrot.slane %v560_v46, 2  ;;  %v552_v57 = vrot.slane %v551_v52, 4  ;;  %v615_v58 = vpop.permute.xlu1 %614  ;;  %v702_v48 = vpop.permute.xlu0 %701 }
 0x17d   : > { %v546_v60 = vadd.f32 %v545_v51, %v544_v43  ;;  %v617_v62 = vsel %vm616_vm6, %v611_v39, %v613_v38  ;;  %v623_v1 = vmul.f32 %v611_v39, %v1700_v63  ;;  %v459_v3 = vrot.slane %v458_v50, 1 }
 0x17e   : > { %v1785_v61 = vadd.f32 %v542_v53, %v541_v44  ;;  %v562_v4 = vadd.f32 %v561_v56, %v560_v46  ;;  %v553_v9 = vadd.f32 %v552_v57, %v551_v52  ;;  %v1787_v6 = vadd.f32 %v467_v55, %v466_v45 }
 0x17f   : > { %v547_v8 = vrot.slane %v546_v60, 2  ;;  %v624_v18 = vmul.f32 %v617_v62, %v1702_v0  ;;  %v627_v19 = vsel %vm438_vm1, %v623_v1, 0.0  ;;  %v717_v21 = vmul.f32 %v702_v48, %v1700_v63 }
 0x180   : > { %v563_v10 = vrot.slane %v562_v4, 1  ;;  %v554_v14 = vrot.slane %v553_v9, 2  ;;  %v628_v20 = vrot.slane %v627_v19, 4  ;;  %v704_v15 = vpop.permute.xlu1 %703  ;;  %v618_v23 = vsel %vm616_vm6, %v613_v38, %v615_v58  ;;  %v706_v36 = vpop.permute.xlu0 %705 }
 0x181   : > { %v548_v16 = vadd.f32 %v547_v8, %v546_v60  ;;  %v634_v22 = vsel %vm446_vm2, %v624_v18, 0.0  ;;  %v626_v24 = vmul.f32 %v615_v58, %v1728_v12  ;;  %v1795_v25 = vadd.f32 %v459_v3, %v458_v50 }
 0x182   : > { %v555_v26 = vadd.f32 %v554_v14, %v553_v9  ;;  %v629_v27 = vadd.f32 %v628_v20, %v627_v19  ;;  %v635_v28 = vrot.slane %v634_v22, 4  ;;  %v721_v30 = vsel %vm438_vm1, %v717_v21, 0.0 }
 0x183   : > { %v549_v29 = vrot.slane %v548_v16, 1  ;;  %v625_v31 = vmul.f32 %v618_v23, %v1707_v2  ;;  %v648_v63 = vsel %vm461_vm3, %v626_v24, 0.0  ;;  %v1800_v32 = vadd.f32 %v563_v10, %v562_v4 }
 0x184   : > { %v630_v33 = vrot.slane %v629_v27, 2  ;;  %v636_v34 = vadd.f32 %v635_v28, %v634_v22  ;;  %v722_v35 = vrot.slane %v721_v30, 4  ;;  %v556_v37 = vrot.slane %v555_v26, 1  ;;  %v708_v45 = vpop.permute.xlu1 %707 }
 0x185   : > { %v641_v38 = vsel %vm446_vm2, %v625_v31, 0.0  ;;  %v649_v39 = vrot.slane %v648_v63, 4  ;;  %v710_v40 = vsel %vm709_vm7, %v702_v48, %v704_v15  ;;  %v550_v41 = vadd.f32 %v549_v29, %v548_v16 }
 0x186   : > { %v631_v42 = vadd.f32 %v630_v33, %v629_v27  ;;  %v637_v43 = vrot.slane %v636_v34, 2  ;;  %v723_v44 = vadd.f32 %v722_v35, %v721_v30  ;;  %v642_v46 = vrot.slane %v641_v38, 4 }
 0x187   : > { %v650_v50 = vadd.f32 %v649_v39, %v648_v63  ;;  %v711_v51 = vsel %vm709_vm7, %v704_v15, %v706_v36  ;;  %v718_v52 = vmul.f32 %v710_v40, %v1702_v0  ;;  %v712_v1 = vsel %vm709_vm7, %v706_v36, %v708_v45 }
 0x188   : > { %v632_v53 = vrot.slane %v631_v42, 1  ;;  %v638_v55 = vadd.f32 %v637_v43, %v636_v34  ;;  %v724_v56 = vrot.slane %v723_v44, 2  ;;  %v719_v57 = vmul.f32 %v711_v51, %v1707_v2 }
 0x189   : > { %v643_v58 = vadd.f32 %v642_v46, %v641_v38  ;;  %v651_v60 = vrot.slane %v650_v50, 2  ;;  %v728_v62 = vsel %vm446_vm2, %v718_v52, 0.0  ;;  %v557_v48 = vadd.f32 %v556_v37, %v555_v26 }
 0x18a   : > { %v639_v3 = vrot.slane %v638_v55, 1  ;;  %v725_v4 = vadd.f32 %v724_v56, %v723_v44  ;;  %v729_v9 = vrot.slane %v728_v62, 4  ;;  %v735_v19 = vsel %vm446_vm2, %v719_v57, 0.0 }
 0x18b   : > { %v644_v8 = vrot.slane %v643_v58, 2  ;;  %v652_v18 = vadd.f32 %v651_v60, %v650_v50  ;;  %v720_v0 = vmul.f32 %v712_v1, %v1728_v12  ;;  %v633_v10 = vadd.f32 %v632_v53, %v631_v42 }
 0x18c   : > { %v640_v14 = vadd.f32 %v639_v3, %v638_v55  ;;  %v730_v20 = vadd.f32 %v729_v9, %v728_v62  ;;  %v736_v2 = vrot.slane %v735_v19, 4  ;;  %v473_v22 = vcombine.low %v1778_v49, %v1781_v59 }
 0x18d   : > { %v645_v21 = vadd.f32 %v644_v8, %v643_v58  ;;  %v653_v15 = vrot.slane %v652_v18, 1  ;;  %v742_v16 = vsel %vm461_vm3, %v720_v0, 0.0  ;;  %v726_v23 = vrot.slane %v725_v4, 1 }
 0x18e   : > { %v731_v24 = vrot.slane %v730_v20, 2  ;;  %v737_v26 = vadd.f32 %v736_v2, %v735_v19  ;;  %v743_v27 = vrot.slane %v742_v16, 4  ;;  %v474_v12 = vcombine.low %v1795_v25, %v1787_v6 }
 0x18f   : > { %v646_v28 = vrot.slane %v645_v21, 1  ;;  %v654_v29 = vadd.f32 %v653_v15, %v652_v18  ;;  %v481_v30 = vrot.slane %v473_v22, %v1752_v54  ;;  %v569_v34 = vcombine.low %v1785_v61, %v550_v41 }
 0x190   : > { %v732_v31 = vadd.f32 %v731_v24, %v730_v20  ;;  %v738_v63 = vrot.slane %v737_v26, 2  ;;  %v744_v33 = vadd.f32 %v743_v27, %v742_v16  ;;  %v488_v36 = vrot.slane %v474_v12, %v1752_v54 }
 0x191   : > { %v647_v35 = vadd.f32 %v646_v28, %v645_v21  ;;  %v570_v49 = vcombine.low %v557_v48, %v1800_v32  ;;  %v659_v59 = vcombine.low %v633_v10, %v640_v14  ;;  %v577_v40 = vrot.slane %v569_v34, %v1752_v54 }
 0x192   : > { %v733_v37 = vrot.slane %v732_v31, 1  ;;  %v739_v38 = vadd.f32 %v738_v63, %v737_v26  ;;  %v745_v39 = vrot.slane %v744_v33, 2  ;;  %v727_v42 = vadd.f32 %v726_v23, %v725_v4 }
 0x193   : > { %v489_v6 = vcombine.low %v481_v30, %v488_v36  ;;  %v584_v25 = vrot.slane %v570_v49, %v1752_v54  ;;  %v660_v43 = vcombine.low %v647_v35, %v654_v29  ;;  %v667_v32 = vrot.slane %v659_v59, %v1752_v54 }
 0x194   : > { %v734_v44 = vadd.f32 %v733_v37, %v732_v31  ;;  %v740_v45 = vrot.slane %v739_v38, 1  ;;  %v746_v46 = vadd.f32 %v745_v39, %v744_v33  ;;  %v845_v62 = vcombine.low %v1760_v17, %v1762_v11 }
 0x195   : > { %v496_v61 = vrot.slane %v489_v6, %v1752_v54  ;;  %v585_v41 = vcombine.low %v577_v40, %v584_v25  ;;  %v674_v50 = vrot.slane %v660_v43, %v1752_v54  ;;  %v860_v8 = vrot.slane %v846_v13, %v1752_v54 }
 0x196   : > { %v741_v51 = vadd.f32 %v740_v45, %v739_v38  ;;  %v747_v52 = vrot.slane %v746_v46, 1  ;;  %v753_v53 = vcombine.low %v727_v42, %v734_v44  ;;  %v853_v9 = vrot.slane %v845_v62, %v1752_v54 }
 0x197   : > { %497 = vrot.lane.b32.xlu1 %v496_v61, %s1465_s10  ;;  %509 = vrot.lane.b32.xlu0 %v496_v61, %s1466_s11  ;;  %v592_v55 = vrot.slane %v585_v41, %v1752_v54  ;;  %v675_v56 = vcombine.low %v667_v32, %v674_v50  ;;  %vm930_vm1 = vcmask 1031168   ;;  %vm965_vm2 = vcmask 883712  }
 0x198   : > { %v748_v57 = vadd.f32 %v747_v52, %v746_v46  ;;  %v761_v58 = vrot.slane %v753_v53, %v1752_v54  ;;  %v791_v60 = vrot.slane %v741_v51, %v1752_v54  ;;  %v861_v7 = vcombine.low %v853_v9, %v860_v8 }
 0x199   : > { %v682_v48 = vrot.slane %v675_v56, %v1752_v54  ;;  %vm1026_vm3 = vcmask 1040384   ;;  %vm1043_vm5 = vcmask 490496  }
 0x19a   : > { %v754_v1 = vcombine.low %v741_v51, %v748_v57  ;;  %v792_v3 = vcombine.low %v761_v58, %v791_v60  ;;  %v868_v47 = vrot.slane %v861_v7, %v1752_v54 }
 0x19b   : > { %601 = vrot.lane.b32.xlu1 %v592_v55, %s1467_s15  ;;  %593 = vrot.lane.b32.xlu0 %v592_v55, %s1465_s10 }
 0x19c   : > { %v768_v4 = vrot.slane %v754_v1, %v1752_v54  ;;  %v799_v17 = vrot.slane %v792_v3, %v1752_v54 }
 0x19e   : > { %v769_v18 = vcombine.low %v761_v58, %v768_v4 }
 0x19f   : > { %691 = vrot.lane.b32.xlu1 %v682_v48, %s1468_s12  ;;  %683 = vrot.lane.b32.xlu0 %v682_v48, %s1465_s10 }
 0x1a0   : > { %v776_v11 = vrot.slane %v769_v18, %v1752_v54 }
 0x1a3   : > { %800 = vrot.lane.b32.xlu1 %v799_v17, %s1469_s19  ;;  %777 = vrot.lane.b32.xlu0 %v776_v11, %s1465_s10 }
 0x1a7   : > { %869 = vrot.lane.b32.xlu0 %v868_v47, %s1465_s10 }
 0x209   : > { %v510_v19 = vpop.permute.xlu0 %509  ;;  %v498_v0 = vpop.permute.xlu1 %497 }
 0x20a   : > { %v511_v14 = vrot.slane %v510_v19, 1  ;;  %v499_v2 = vrot.slane %v498_v0, 1 }
 0x20c   : > { %v513_v21 = vsel %vm512_vm9, %v510_v19, %v511_v14  ;;  %v501_v54 = vsel %vm500_vm10, %v498_v0, %v499_v2 }
 0x20d   : > { %518 = vst.msk [vmem:[#allocation2 + $0x18] ss:$8 sm:$0x7] %vm1847_vm11, %v513_v21  ;;  %v594_v15 = vpop.permute.xlu0 %593  ;;  %v602_v16 = vpop.permute.xlu1 %601 }
 0x20e   : > { %507 = vst.msk [vmem:[#allocation2] ss:$8 sm:$0x7] %vm1852_vm12, %v501_v54  ;;  %v595_v22 = vrot.slane %v594_v15, 1  ;;  %v603_v23 = vrot.slane %v602_v16, 1 }
 0x210   : > { %v596_v5 = vsel %vm500_vm10, %v594_v15, %v595_v22  ;;  %v605_v24 = vsel %vm604_vm13, %v602_v16, %v603_v23 }
 0x211   : > { %599 = vst.msk [vmem:[#allocation2 + $0x1] ss:$8 sm:$0x7] %vm1852_vm12, %v596_v5  ;;  %v684_v26 = vpop.permute.xlu0 %683  ;;  %v692_v27 = vpop.permute.xlu1 %691  ;;  %v1012_v5 = vld [vmem:[#allocation7 + $0xc] sm:$0x11] }
 0x212   : > { %608 = vst.msk [vmem:[#allocation2 + $0x7] ss:$8 sm:$0x7] %vm1847_vm11, %v605_v24  ;;  %v685_v28 = vrot.slane %v684_v26, 1  ;;  %v693_v29 = vrot.slane %v692_v27, 1 }
 0x213   : > { %v1013_v24 = vld [vmem:[#allocation7 + $0x14] sm:$0x1] }
 0x214   : > { %v686_v12 = vsel %vm500_vm10, %v684_v26, %v685_v28  ;;  %v880_v30 = vld [vmem:[#allocation2 + $0x18] sm:$0x1]  ;;  %v695_v31 = vsel %vm694_vm14, %v692_v27, %v693_v29  ;;  %v1868_v63 = vld [vmem:[#allocation2 + $0x20] sm:$0x1]  ;;  %v882_v49 = vld [vmem:[#allocation2 + $0x28] sm:$0x1] }
 0x215   : > { %689 = vst.msk [vmem:[#allocation2 + $0x2] ss:$8 sm:$0x7] %vm1852_vm12, %v686_v12  ;;  %895 = vrot.lane.b32.xlu1 %v880_v30, %s1470_s22  ;;  %897 = vrot.lane.b32.xlu0 %v1868_v63, %s1470_s22  ;;  %v801_v33 = vpop.permute.xlu1 %800  ;;  %v778_v34 = vpop.permute.xlu0 %777  ;;  %v1017_v12 = vunpack.c.l.bf16 %v1012_v5 }
 0x216   : > { %698 = vst.msk [vmem:[#allocation2 + $0x6] ss:$8 sm:$0x7] %vm1847_vm11, %v695_v31  ;;  %v802_v35 = vrot.slane %v801_v33, 1  ;;  %v779_v36 = vrot.slane %v778_v34, 1  ;;  %v1010_v31 = vld [vmem:[#allocation7] sm:$0xff] }
 0x218   : > { %v804_v59 = vsel %vm803_vm15, %v801_v33, %v802_v35  ;;  %v780_v37 = vsel %vm500_vm10, %v778_v34, %v779_v36  ;;  %v1019_v35 = vunpack.c.l.bf16 %v1013_v24 }
 0x219   : > { %899 = vrot.lane.b32.xlu1 %v882_v49, %s1470_s22  ;;  %807 = vst.msk [vmem:[#allocation2 + $0x5] ss:$8 sm:$0x7] %vm1847_vm11, %v804_v59  ;;  %v870_v38 = vpop.permute.xlu0 %869 }
 0x21a   : > { %783 = vst.msk [vmem:[#allocation2 + $0x3] ss:$8 sm:$0x7] %vm1852_vm12, %v780_v37  ;;  %v871_v39 = vrot.slane %v870_v38, 1  ;;  %v1018_v37 = vunpack.c.h.bf16 %v1012_v5 }
 0x21c   : > { %v872_v40 = vsel %vm500_vm10, %v870_v38, %v871_v39  ;;  %v1014_v39 = vunpack.c.l.bf16 %v1010_v31 }
 0x21d   : > { %875 = vst.msk [vmem:[#allocation2 + $0x4] ss:$8 sm:$0x7] %vm1852_vm12, %v872_v40 }
 0x224   : > { %v878_v42 = vld [vmem:[#allocation2 + $0x8] sm:$0xff]  ;;  %v877_v6 = vld [vmem:[#allocation2] sm:$0xff]  ;;  %v879_v25 = vld [vmem:[#allocation2 + $0x10] sm:$0xff] }
 0x225   : > { %891 = vrot.lane.b32.xlu1 %v878_v42, %s1470_s22  ;;  %889 = vrot.lane.b32.xlu0 %v877_v6, %s1470_s22 }
 0x229   : > { %924 = vrot.lane.b32.xlu1 %v880_v30, %s1471_s24  ;;  %893 = vrot.lane.b32.xlu0 %v879_v25, %s1470_s22 }
 0x22d   : > { %928 = vrot.lane.b32.xlu1 %v882_v49, %s1471_s24  ;;  %926 = vrot.lane.b32.xlu0 %v1868_v63, %s1471_s24 }
 0x231   : > { %920 = vrot.lane.b32.xlu1 %v878_v42, %s1471_s24  ;;  %918 = vrot.lane.b32.xlu0 %v877_v6, %s1471_s24 }
 0x235   : > { %922 = vrot.lane.b32.xlu0 %v879_v25, %s1471_s24 }
 0x287   : > { %v896_v43 = vpop.permute.xlu1 %895  ;;  %v898_v44 = vpop.permute.xlu0 %897 }
 0x288   : > { %v904_v55 = vsel %vm901_vm0, %v896_v43, %v898_v44 }
 0x289   : > { %v915_v58 = vadd.f32 %v904_v55, %v880_v30 }
 0x28b   : > { %v900_v45 = vpop.permute.xlu1 %899 }
 0x28c   : > { %v917_v50 = vadd.f32 %v900_v45, %v882_v49  ;;  %v905_v62 = vsel %vm901_vm0, %v898_v44, %v900_v45 }
 0x28d   : > { %v916_v18 = vadd.f32 %v905_v62, %v1868_v63 }
 0x297   : > { %v892_v46 = vpop.permute.xlu1 %891  ;;  %v890_v61 = vpop.permute.xlu0 %889 }
 0x298   : > { %v902_v11 = vsel %vm901_vm0, %v890_v61, %v892_v46 }
 0x299   : > { %v912_v0 = vadd.f32 %v902_v11, %v877_v6 }
 0x29b   : > { %v925_v41 = vpop.permute.xlu1 %924  ;;  %v894_v32 = vpop.permute.xlu0 %893 }
 0x29c   : > { %v914_v60 = vadd.f32 %v894_v32, %v879_v25  ;;  %v903_v13 = vsel %vm901_vm0, %v892_v46, %v894_v32 }
 0x29d   : > { %v913_v17 = vadd.f32 %v903_v13, %v878_v42  ;;  %v1011_v42 = vld [vmem:[#allocation7 + $0x8] sm:$0xf] }
 0x29e   : > { %v1016_v61 = vunpack.c.l.bf16 %v1011_v42 }
 0x29f   : > { %v929_v51 = vpop.permute.xlu1 %928  ;;  %v927_v52 = vpop.permute.xlu0 %926 }
 0x2a0   : > { %v946_v53 = vadd.f32 %v929_v51, %v917_v50  ;;  %v933_v57 = vsel %vm930_vm1, %v925_v41, %v927_v52  ;;  %v934_v9 = vsel %vm930_vm1, %v927_v52, %v929_v51  ;;  %v1015_v51 = vunpack.c.h.bf16 %v1010_v31 }
 0x2a1   : > { %v944_v48 = vadd.f32 %v933_v57, %v915_v58  ;;  %v945_v7 = vadd.f32 %v934_v9, %v916_v18 }
 0x2a2   : > { %963 = vrot.lane.b32.xlu1 %v946_v53, %s1472_s20 }
 0x2a3   : > { %v919_v56 = vpop.permute.xlu0 %918  ;;  %v921_v3 = vpop.permute.xlu1 %920 }
 0x2a4   : > { %v931_v19 = vsel %vm930_vm1, %v919_v56, %v921_v3 }
 0x2a5   : > { %v941_v10 = vadd.f32 %v931_v19, %v912_v0 }
 0x2a6   : > { %992 = vrot.lane.b32.xlu1 %v946_v53, %s1468_s12 }
 0x2a7   : > { %v923_v1 = vpop.permute.xlu0 %922 }
 0x2a8   : > { %v943_v4 = vadd.f32 %v923_v1, %v914_v60  ;;  %v932_v8 = vsel %vm930_vm1, %v921_v3, %v923_v1 }
 0x2a9   : > { %v942_v47 = vadd.f32 %v932_v8, %v913_v17 }
 0x2aa   : > { %959 = vrot.lane.b32.xlu1 %v944_v48, %s1472_s20  ;;  %957 = vrot.lane.b32.xlu0 %v943_v4, %s1472_s20 }
 0x2ae   : > { %961 = vrot.lane.b32.xlu0 %v945_v7, %s1472_s20  ;;  %955 = vrot.lane.b32.xlu1 %v942_v47, %s1472_s20 }
 0x2b2   : > { %953 = vrot.lane.b32.xlu0 %v941_v10, %s1472_s20  ;;  %988 = vrot.lane.b32.xlu1 %v944_v48, %s1468_s12 }
 0x2b6   : > { %990 = vrot.lane.b32.xlu0 %v945_v7, %s1468_s12  ;;  %984 = vrot.lane.b32.xlu1 %v942_v47, %s1468_s12 }
 0x2ba   : > { %982 = vrot.lane.b32.xlu0 %v941_v10, %s1468_s12 }
 0x2be   : > { %986 = vrot.lane.b32.xlu0 %v943_v4, %s1468_s12 }
 0x314   : > { %v964_v14 = vpop.permute.xlu1 %963 }
 0x315   : > { %v981_v63 = vadd.f32 %v964_v14, %v946_v53 }
 0x318   : > { %v993_v20 = vpop.permute.xlu1 %992 }
 0x319   : > { %v1009_v49 = vadd.f32 %v993_v20, %v981_v63 }
 0x31b   : > { %v1025_v41 = vmul.f32 %v1019_v35, %v1009_v49 }
 0x31c   : > { %v960_v2 = vpop.permute.xlu1 %959  ;;  %v958_v21 = vpop.permute.xlu0 %957 }
 0x31d   : > { %v978_v46 = vadd.f32 %v958_v21, %v943_v4 }
 0x320   : > { %v962_v54 = vpop.permute.xlu0 %961  ;;  %v956_v15 = vpop.permute.xlu1 %955 }
 0x321   : > { %v968_v22 = vsel %vm965_vm2, %v960_v2, %v962_v54  ;;  %v969_v26 = vsel %vm965_vm2, %v962_v54, %v964_v14  ;;  %v967_v6 = vsel %vm965_vm2, %v956_v15, %v958_v21 }
 0x322   : > { %v979_v27 = vadd.f32 %v968_v22, %v944_v48  ;;  %v980_v36 = vadd.f32 %v969_v26, %v945_v7  ;;  %v977_v32 = vadd.f32 %v967_v6, %v942_v47  ;;  %v1046_v48 = vsel %vm1045_vm4, %v1025_v41, -inf }
 0x324   : > { %v954_v16 = vpop.permute.xlu0 %953  ;;  %v989_v23 = vpop.permute.xlu1 %988 }
 0x325   : > { %v966_v29 = vsel %vm965_vm2, %v954_v16, %v956_v15 }
 0x326   : > { %v976_v59 = vadd.f32 %v966_v29, %v941_v10 }
 0x328   : > { %v991_v28 = vpop.permute.xlu0 %990  ;;  %v985_v38 = vpop.permute.xlu1 %984 }
 0x329   : > { %v996_v30 = vsel %vm694_vm14, %v989_v23, %v991_v28  ;;  %v997_v33 = vsel %vm694_vm14, %v991_v28, %v993_v20 }
 0x32a   : > { %v1007_v34 = vadd.f32 %v996_v30, %v979_v27  ;;  %v1008_v25 = vadd.f32 %v997_v33, %v980_v36 }
 0x32c   : > { %v983_v40 = vpop.permute.xlu0 %982  ;;  %v1023_v43 = vmul.f32 %v1017_v12, %v1007_v34  ;;  %v1024_v53 = vmul.f32 %v1018_v37, %v1008_v25 }
 0x32d   : > { %v994_v44 = vsel %vm694_vm14, %v983_v40, %v985_v38 }
 0x32e   : > { %v1004_v45 = vadd.f32 %v994_v44, %v976_v59  ;;  %v1027_v55 = vsel %vm1026_vm3, %v1023_v43, -inf  ;;  %v1035_v3 = vsel %vm1026_vm3, %v1024_v53, -inf }
 0x330   : > { %v1020_v50 = vmul.f32 %v1014_v39, %v1004_v45  ;;  %v987_v52 = vpop.permute.xlu0 %986 }
 0x331   : > { %v995_v56 = vsel %vm694_vm14, %v985_v38, %v987_v52  ;;  %v1006_v57 = vadd.f32 %v987_v52, %v978_v46 }
 0x332   : > { %v1028_v58 = vmax.f32 %v1020_v50, %v1027_v55  ;;  %v1005_v60 = vadd.f32 %v995_v56, %v977_v32 }
 0x333   : > { %v1022_v62 = vmul.f32 %v1016_v61, %v1006_v57 }
 0x334   : > { %v1029_v13 = vrot.slane %v1028_v58, 4  ;;  %v1021_v1 = vmul.f32 %v1015_v51, %v1005_v60 }
 0x335   : > { %v1044_v4 = vsel %vm1043_vm5, %v1022_v62, -inf }
 0x336   : > { %v1030_v9 = vmax.f32 %v1028_v58, %v1029_v13  ;;  %v1036_v8 = vmax.f32 %v1021_v1, %v1035_v3  ;;  %v1047_v18 = vmax.f32 %v1044_v4, %v1046_v48 }
 0x338   : > { %v1031_v17 = vrot.slane %v1030_v9, 2  ;;  %v1037_v11 = vrot.slane %v1036_v8, 4  ;;  %v1048_v7 = vrot.slane %v1047_v18, 4 }
 0x33a   : > { %v1032_v47 = vmax.f32 %v1030_v9, %v1031_v17  ;;  %v1038_v19 = vmax.f32 %v1036_v8, %v1037_v11  ;;  %v1049_v0 = vmax.f32 %v1047_v18, %v1048_v7 }
 0x33c   : > { %v1033_v10 = vrot.slane %v1032_v47, 1  ;;  %v1039_v14 = vrot.slane %v1038_v19, 2  ;;  %v1050_v20 = vrot.slane %v1049_v0, 2 }
 0x33e   : > { %v1034_v2 = vmax.f32 %v1032_v47, %v1033_v10  ;;  %v1040_v21 = vmax.f32 %v1038_v19, %v1039_v14  ;;  %v1051_v54 = vmax.f32 %v1049_v0, %v1050_v20 }
 0x340   : > { %v1054_v15 = vsub.f32 %v1020_v50, %v1034_v2  ;;  %v1057_v16 = vsub.f32 %v1023_v43, %v1034_v2  ;;  %v1041_v22 = vrot.slane %v1040_v21, 1  ;;  %v1052_v23 = vrot.slane %v1051_v54, 1 }
 0x342   : > { %v1060_v5 = vmul.f32 1.442695, %v1054_v15  ;;  %v1066_v24 = vmul.f32 1.442695, %v1057_v16  ;;  %v1042_v26 = vmax.f32 %v1040_v21, %v1041_v22  ;;  %v1053_v27 = vmax.f32 %v1051_v54, %v1052_v23 }
 0x344   : > { %1302 = vpow2.f32 %v1060_v5  ;;  %v1055_v28 = vsub.f32 %v1021_v1, %v1042_v26  ;;  %v1056_v29 = vsub.f32 %v1022_v62, %v1053_v27  ;;  %v1058_v12 = vsub.f32 %v1024_v53, %v1042_v26 }
 0x345   : > { %1304 = vpow2.f32 %v1066_v24  ;;  %v1059_v30 = vsub.f32 %v1025_v41, %v1053_v27 }
 0x346   : > { %v1062_v31 = vmul.f32 1.442695, %v1055_v28  ;;  %v1064_v63 = vmul.f32 1.442695, %v1056_v29  ;;  %v1068_v33 = vmul.f32 1.442695, %v1058_v12 }
 0x347   : > { %v1070_v34 = vmul.f32 1.442695, %v1059_v30 }
 0x348   : > { %1306 = vpow2.f32 %v1062_v31 }
 0x349   : > { %1308 = vpow2.f32 %v1064_v63 }
 0x34a   : > { %1310 = vpow2.f32 %v1068_v33 }
 0x34b   : > { %1312 = vpow2.f32 %v1070_v34 }
 0x34e   : > { %v1303_v35 = vpop.eup %1302 }
 0x34f   : > { %v1305_v36 = vpop.eup %1304 }
 0x350   : > { %v1072_v49 = vsel %vm1026_vm3, %v1305_v36, 0.0 }
 0x351   : > { %v1073_v59 = vadd.f32 %v1303_v35, %v1072_v49 }
 0x352   : > { %v1307_v37 = vpop.eup %1306 }
 0x353   : > { %v1309_v38 = vpop.eup %1308  ;;  %v1074_v39 = vrot.slane %v1073_v59, 4 }
 0x354   : > { %v1311_v40 = vpop.eup %1310  ;;  %v1088_v42 = vsel %vm1043_vm5, %v1309_v38, 0.0 }
 0x355   : > { %v1313_v6 = vpop.eup %1312  ;;  %v1075_v25 = vadd.f32 %v1074_v39, %v1073_v59  ;;  %v1080_v43 = vsel %vm1026_vm3, %v1311_v40, 0.0 }
 0x356   : > { %v1081_v44 = vadd.f32 %v1307_v37, %v1080_v43  ;;  %v1089_v45 = vsel %vm1045_vm4, %v1313_v6, 0.0 }
 0x357   : > { %v1076_v46 = vrot.slane %v1075_v25, 2  ;;  %v1090_v61 = vadd.f32 %v1089_v45, %v1088_v42 }
 0x358   : > { %v1082_v41 = vrot.slane %v1081_v44, 4 }
 0x359   : > { %v1077_v32 = vadd.f32 %v1076_v46, %v1075_v25  ;;  %v1091_v50 = vrot.slane %v1090_v61, 4 }
 0x35a   : > { %v1083_v51 = vadd.f32 %v1082_v41, %v1081_v44 }
 0x35b   : > { %v1078_v52 = vrot.slane %v1077_v32, 1  ;;  %v1092_v53 = vadd.f32 %v1091_v50, %v1090_v61 }
 0x35c   : > { %v1084_v55 = vrot.slane %v1083_v51, 2 }
 0x35d   : > { %v1079_v56 = vadd.f32 %v1078_v52, %v1077_v32  ;;  %v1093_v57 = vrot.slane %v1092_v53, 2 }
 0x35e   : > { %v1085_v58 = vadd.f32 %v1084_v55, %v1083_v51 }
 0x35f   : > { %1314 = vrcp.f32 %v1079_v56  ;;  %v1094_v60 = vadd.f32 %v1093_v57, %v1092_v53 }
 0x360   : > { %v1086_v62 = vrot.slane %v1085_v58, 1 }
 0x361   : > { %v1095_v13 = vrot.slane %v1094_v60, 1 }
 0x362   : > { %v1087_v1 = vadd.f32 %v1086_v62, %v1085_v58 }
 0x363   : > { %v1096_v48 = vadd.f32 %v1095_v13, %v1094_v60 }
 0x364   : > { %1316 = vrcp.f32 %v1087_v1 }
 0x365   : > { %1318 = vrcp.f32 %v1096_v48 }
 0x369   : > { %v1315_v3 = vpop.eup %1314 }
 0x36a   : > { %v1100_v4 = vmul.f32 %v1315_v3, %v1303_v35  ;;  %v1103_v9 = vmul.f32 %v1315_v3, %v1305_v36 }
 0x36c   : > { %1106 = vst [vmem:[%s215_s28] sm:$0xff] %v1100_v4  ;;  %1109 = vst [vmem:[%s215_s28 + $0x18] sm:$0x1] %v1103_v9 }
 0x36e   : > { %v1317_v8 = vpop.eup %1316 }
 0x36f   : > { %v1319_v18 = vpop.eup %1318  ;;  %v1101_v17 = vmul.f32 %v1317_v8, %v1307_v37  ;;  %v1104_v11 = vmul.f32 %v1317_v8, %v1311_v40 }
 0x370   : > { %v1102_v7 = vmul.f32 %v1319_v18, %v1309_v38  ;;  %v1105_v47 = vmul.f32 %v1319_v18, %v1313_v6 }
 0x371   : > { %1107 = vst [vmem:[%s215_s28 + $0x8] sm:$0xff] %v1101_v17  ;;  %1110 = vst [vmem:[%s215_s28 + $0x20] sm:$0x1] %v1104_v11 }
 0x372   : > { %1108 = vst.msk [vmem:[%s215_s28 + $0x10] sm:$0xff] %vm1043_vm5, %v1102_v7 }
 0x373   : > { %1111 = vst.msk [vmem:[%s215_s28 + $0x28] sm:$0x1] %vm1045_vm4, %v1105_v47 }
 0x374 PF: > { %p14_p1 = scmp.ge.s32.totalorder %s1586_s27, 4   ;;  %s1956_s12 = smov %s1440_s13 }
 0x375   : > { %s1957_s13 = smov %s1444_s14  ;;  %s1958_s14 = smov %s1597_s30 }
 0x376   : > { %s1959_s15 = smov %s1586_s27  ;;  %16 = sbr.rel (!%p14_p1) target bundleno = 4 (0x4), region = 89 }
 0x37d   :  { %1133 = vsyncpa [#allocation4], 1 }
 0x37e   :  { %1135 = vsyncpa [#allocation4 + $0x1], 1 }
 0x37f   :  { %1136 = vsyncpa [#allocation6], 1 }
 0x380   :  { %1138 = vsyncpa [#allocation6 + $0x1], 1 }

</bundles_post_ra>
